<compile_context>
chip_gen: v7x
topology: tpu7x:2x2x1
jax: 0.10.0
libtpu: 0.0.40
codegen_flags: <defaults>
</compile_context>

<pallas_src>
import math

import jax
import jax.numpy as jnp
from jax import lax
from jax.experimental import pallas as pl
from jax.experimental.pallas import tpu as pltpu

EMBED_DIM = 32          # embedding_dim (must be even)
PADDING_IDX = 1         # padding_idx
RAND_MAX = 4            # rand_max
INIT_SIZE = 1024        # init_size (reference sinusoidal table size)


def _sinpos_kernel(meta_ref, e_ref, out_ref):
    """out[r, l] = sin( sum_k meta[k, r] * E[k, l] )

    meta (2G, tr): rows 0..G-1 = masked positions of token r*G+g,
                   rows G..2G-1 = keep-gate (1.0 keep / 0.0 zero row).
    E    (2G, lanes): pos rows carry the per-lane inverse frequency of their
                   lane group, gate rows carry the pi/2 phase of the cos half.
    One small MXU matmul performs the group broadcast, the frequency multiply
    and the sin/cos phase selection at once; padding rows have meta column
    all-zero -> angle exactly 0 -> sin(0) == 0."""
    ang = lax.dot_general(
        meta_ref[...], e_ref[...],
        dimension_numbers=(((0,), (0,)), ((), ())),   # contract the 2G dim
        preferred_element_type=jnp.float32)
    out_ref[...] = jnp.sin(ang)                        # single EUP pass, dense store


def rand_start_sin_pos_embedding(tokens, rand_pos,
                                 embedding_dim=EMBED_DIM,
                                 padding_idx=PADDING_IDX):
    """tokens: (bsz, seq) int; rand_pos: (bsz,) int per-batch random start
    offset (all zeros reproduces eval mode).  Returns (bsz, seq, dim) f32."""
    bsz, seq = tokens.shape
    assert embedding_dim % 2 == 0, "odd embedding_dim not supported"  # TODO(synk)
    assert padding_idx >= 0
    half = embedding_dim // 2

    # --- fairseq make_positions + random start (tiny; stays in XLA) --------
    mask = (tokens != padding_idx).astype(jnp.int32)
    positions = jnp.cumsum(mask, axis=1) * mask + padding_idx
    positions = positions + rand_pos.astype(jnp.int32)[:, None]       # (bsz, seq)
    # Gate AFTER the rand shift: matches the PyTorch gather, where only the
    # table row `padding_idx` is zeroed (so rand_pos > 0 un-zeroes padding).
    gate = (positions != padding_idx).astype(jnp.float32)
    posf = positions.astype(jnp.float32) * gate                        # 0 where gated

    # --- lane packing: G consecutive tokens per 128-lane output row --------
    if embedding_dim < 128 and 128 % embedding_dim == 0:
        groups = 128 // embedding_dim
    else:
        groups = 1            # dim >= 128 is already lane-dense
    lanes = groups * embedding_dim

    n_tokens = bsz * seq
    n_rows = -(-n_tokens // groups)                # ceil: packed output rows
    n_rows_pad = -(-n_rows // 8) * 8               # sublane alignment
    pad = n_rows_pad * groups - n_tokens           # pad tokens -> pos=gate=0

    pos_flat = jnp.pad(posf.reshape(-1), (0, pad))
    gate_flat = jnp.pad(gate.reshape(-1), (0, pad))
    # Fused, HBM-lane-dense metadata: (2G, n_rows_pad), row index on minor dim.
    meta = jnp.concatenate(
        [pos_flat.reshape(n_rows_pad, groups).T,
         gate_flat.reshape(n_rows_pad, groups).T], axis=0)

    # --- constant expansion matrix E: (2G, lanes) ---------------------------
    emb_scale = math.log(10000.0) / (half - 1)
    inv_freq = jnp.exp(jnp.arange(half, dtype=jnp.float32) * -emb_scale)
    freq_row = jnp.concatenate([inv_freq, inv_freq])                           # (dim,)
    phase_row = jnp.concatenate([jnp.zeros((half,), jnp.float32),
                                 jnp.full((half,), jnp.pi / 2, jnp.float32)])  # (dim,)
    eye_g = jnp.eye(groups, dtype=jnp.float32)
    e_mat = jnp.concatenate([jnp.kron(eye_g, freq_row[None, :]),
                             jnp.kron(eye_g, phase_row[None, :])], axis=0)     # (2G, lanes)

    # ~4 MiB f32 output tile per grid step; double-buffered VMEM stays ~9 MiB.
    rows_per_tile = max(128, ((4 << 20) // (lanes * 4)) // 128 * 128)
    tr = n_rows_pad if n_rows_pad <= rows_per_tile else rows_per_tile

    out = pl.pallas_call(
        _sinpos_kernel,
        out_shape=jax.ShapeDtypeStruct((n_rows_pad, lanes), jnp.float32),
        grid=(pl.cdiv(n_rows_pad, tr),),
        in_specs=[
            pl.BlockSpec((2 * groups, tr), lambda i: (0, i)),       # meta (dense)
            pl.BlockSpec((2 * groups, lanes), lambda i: (0, 0)),    # constant E
        ],
        out_specs=pl.BlockSpec((tr, lanes), lambda i: (i, 0)),
        compiler_params=pltpu.CompilerParams(
            dimension_semantics=("parallel",),
            vmem_limit_bytes=32 * 1024 * 1024),
    )(meta, e_mat)

    # Packed rows are bit-identical to row-major token order: reshape + slice.
    emb = out.reshape(n_rows_pad * groups, embedding_dim)[:n_tokens]
    return emb.reshape(bsz, seq, embedding_dim)


def _reference(tokens, rand_pos, embedding_dim, padding_idx, init_size=INIT_SIZE):
    """Plain-JAX re-implementation of the PyTorch forward (table + gather)."""
    half = embedding_dim // 2
    emb_scale = math.log(10000.0) / (half - 1)
    inv_freq = jnp.exp(jnp.arange(half, dtype=jnp.float32) * -emb_scale)
    pos = jnp.arange(init_size, dtype=jnp.float32)[:, None] * inv_freq[None, :]
    table = jnp.concatenate([jnp.sin(pos), jnp.cos(pos)], axis=1)
    table = table.at[padding_idx].set(0.0)
    mask = (tokens != padding_idx).astype(jnp.int32)
    positions = jnp.cumsum(mask, axis=1) * mask + padding_idx
    positions = positions + rand_pos[:, None].astype(jnp.int32)
    return table[positions]


if __name__ == "__main__":
    key = jax.random.PRNGKey(0)
    bsz, seq = 2, 8
    k_tok, k_rand = jax.random.split(key)

    tokens = jax.random.randint(k_tok, (bsz, seq), 2, 50, dtype=jnp.int32)
    tokens = tokens.at[1, -2:].set(PADDING_IDX)   # right-pad the second sequence

    # training-mode random start offsets: (rand() * rand_max).long()
    max_pos = PADDING_IDX + 1 + seq
    rand_max = min(INIT_SIZE - max_pos, RAND_MAX)
    rand_pos = (jax.random.uniform(k_rand, (bsz,)) * rand_max).astype(jnp.int32)

    # Training mode (random start offsets).
    out = rand_start_sin_pos_embedding(tokens, rand_pos, EMBED_DIM, PADDING_IDX)
    out = jax.block_until_ready(out)
    ref = _reference(tokens, rand_pos, EMBED_DIM, PADDING_IDX)
    assert out.shape == (bsz, seq, EMBED_DIM) and out.dtype == jnp.float32
    assert jnp.allclose(out, ref, atol=1e-4, rtol=1e-4)

    # Eval mode (rand == 0): padding rows must be exactly zero.
    zeros = jnp.zeros((bsz,), jnp.int32)
    out0 = jax.block_until_ready(
        rand_start_sin_pos_embedding(tokens, zeros, EMBED_DIM, PADDING_IDX))
    ref0 = _reference(tokens, zeros, EMBED_DIM, PADDING_IDX)
    assert jnp.allclose(out0, ref0, atol=1e-4, rtol=1e-4)
    assert jnp.all(out0[1, -2:, :] == 0.0)

    print("KERNEL_OK")
</pallas_src>

<mosaic_0001>
module attributes {stable_mosaic.version = 11 : i64} {
  func.func @_sinpos_kernel(%arg0: i32, %arg1: memref<8x8xf32, #tpu.memory_space<vmem>>, %arg2: memref<8x128xf32, #tpu.memory_space<vmem>>, %arg3: memref<8x128xf32, #tpu.memory_space<vmem>>) attributes {dimension_semantics = [#tpu.dimension_semantics<parallel>], iteration_bounds = array<i64: 1>, scalar_prefetch = 0 : i64, scratch_operands = 0 : i64, tpu.core_type = #tpu.core_type<tc>, window_params = [{transform_indices = @transform_0, window_bounds = array<i64: 8, 8>}, {pipeline_mode = #tpu.pipeline_mode<synchronous>, transform_indices = @transform_1, window_bounds = array<i64: 8, 128>}, {transform_indices = @transform_2, window_bounds = array<i64: 8, 128>}]} {
    %c0 = arith.constant 0 : index
    %c0_0 = arith.constant 0 : index
    %0 = vector.load %arg1[%c0, %c0_0] : memref<8x8xf32, #tpu.memory_space<vmem>>, vector<8x8xf32>
    %c0_1 = arith.constant 0 : index
    %c0_2 = arith.constant 0 : index
    %1 = vector.load %arg2[%c0_1, %c0_2] : memref<8x128xf32, #tpu.memory_space<vmem>>, vector<8x128xf32>
    %cst = arith.constant dense<0.000000e+00> : vector<8x128xf32>
    %2 = tpu.matmul %0, %1, %cst {dimension_numbers = #tpu.dot_dimension_numbers<[0], [0], [1], [1], [0, 1, 1, 1], [], []>} : vector<8x8xf32>, vector<8x128xf32>, vector<8x128xf32> -> vector<8x128xf32>
    %3 = math.sin %2 : vector<8x128xf32>
    %c0_3 = arith.constant 0 : index
    %c0_4 = arith.constant 0 : index
    %4 = vector.load %arg3[%c0_3, %c0_4] : memref<8x128xf32, #tpu.memory_space<vmem>>, vector<8x128xf32>
    tpu.vector_store %arg3[%c0_3, %c0_4], %3 {strides = array<i32>} : memref<8x128xf32, #tpu.memory_space<vmem>>, vector<8x128xf32>,
    return
  }
  func.func @transform_0(%arg0: i32) -> (i32, i32) {
    %c0_i32 = arith.constant 0 : i32
    %c0_i32_0 = arith.constant 0 : i32
    return %c0_i32, %arg0 : i32, i32
  }
  func.func @transform_1(%arg0: i32) -> (i32, i32) {
    %c0_i32 = arith.constant 0 : i32
    %c0_i32_0 = arith.constant 0 : i32
    %c0_i32_1 = arith.constant 0 : i32
    return %c0_i32, %c0_i32_0 : i32, i32
  }
  func.func @transform_2(%arg0: i32) -> (i32, i32) {
    %c0_i32 = arith.constant 0 : i32
    %c0_i32_0 = arith.constant 0 : i32
    return %arg0, %c0_i32 : i32, i32
  }
}

</mosaic_0001>

<bundles_post_ra>
// kernel: tpu_custom_call.1
= control target key start
LH: loop header
LB: loop body
LE: loop exit
PB: predicated region body
PF: predicated region fallthrough
CT: control target
= control target key end

     0   :  { %7 = vsyncpa [#allocation3], 0  ;;  %s451_s0 = inlined_call_operand.hbm [shape: f32[8,8], index: 0, kind: input, shape index: {}]   ;;  %s452_s1 = inlined_call_operand.hbm [shape: f32[8,128], index: 1, kind: input, shape index: {}]   ;;  %s453_s2 = inlined_call_operand.hbm [shape: f32[8,128], index: 2, kind: output, shape index: {}]  }
   0x1   :  { %8 = vsyncpa [#allocation6], 0 }
   0x2   :  { %9 = vsyncpa [#allocation4], 0  ;;  %s368_s9 = smov [#allocation2]   ;;  %s369_s11 = smov [#allocation5]  }
   0x3   :  { %s16_s10 = sshll.u32 %s368_s9, 4  ;;  %s26_s12 = sshll.u32 %s369_s11, 4  ;;  %s17_s10 = int_to_ptr.vmem [resolvable:$true] %s16_s10  ;;  %s27_s12 = int_to_ptr.vmem [resolvable:$true] %s26_s12 }
   0x4   :  { %s296_s15 = scalar_lea.hbm %s451_s0, 128 }
   0x5   :  { %p297_p0 = scmp.ne.s32.totalorder %s451_s0, %s296_s15  ;;  %p300_p1 = scmp.lt.u32.totalorder %s296_s15, %s451_s0 }
   0x7   :  { %p302_p2 = pnand %p300_p1, %p297_p0 }
   0x9   :  { %305 = shalt.err (!%p302_p2)
}
   0xa   :  { %s306_s20 = scalar_lea.vmem %s17_s10, 128  ;;  %p311_p4 = scmp.lt.s32.totalorder %s17_s10, %s17_s10 }
   0xb   :  { %p307_p3 = scmp.ne.s32.totalorder %s17_s10, %s306_s20  ;;  %p312_p5 = scmp.lt.s32.totalorder %s306_s20, %s306_s20 }
   0xd   :  { %p313_p6 = por %p312_p5, %p311_p4 }
   0xf   :  { %p314_p7 = pnand %p313_p6, %p307_p3 }
  0x11   :  { %317 = shalt.err (!%p314_p7)
}
  0x12   :  { %19 = dma.hbm_to_vmem [thread:$0]  %s451_s0, 128, %s17_s10, [#allocation3]  }
  0x13   :  { %s318_s25 = scalar_lea.hbm %s452_s1, 128 }
  0x14   :  { %p319_p8 = scmp.ne.s32.totalorder %s452_s1, %s318_s25  ;;  %p322_p9 = scmp.lt.u32.totalorder %s318_s25, %s452_s1 }
  0x16   :  { %p324_p10 = pnand %p322_p9, %p319_p8 }
  0x18   :  { %327 = shalt.err (!%p324_p10)
}
  0x19   :  { %s328_s30 = scalar_lea.vmem %s27_s12, 128  ;;  %p333_p12 = scmp.lt.s32.totalorder %s27_s12, %s27_s12 }
  0x1a   :  { %p329_p11 = scmp.ne.s32.totalorder %s27_s12, %s328_s30  ;;  %p334_p13 = scmp.lt.s32.totalorder %s328_s30, %s328_s30 }
  0x1c   :  { %p335_p0 = por %p334_p13, %p333_p12 }
  0x1e   :  { %p336_p1 = pnand %p335_p0, %p329_p11 }
  0x20   :  { %339 = shalt.err (!%p336_p1)
}
  0x21   :  { %29 = dma.hbm_to_vmem [thread:$0]  %s452_s1, 128, %s27_s12, [#allocation6]  }
  0x22   :  { %362 = dma.done.wait [#allocation3], 128  }
  0x23   :  { %363 = vsyncadd [#allocation3], 4294967168 }
  0x24   :  { %364 = dma.done.wait [#allocation6], 128  }
  0x25   :  { %365 = vsyncadd [#allocation6], 4294967168  ;;  %v370_v0 = vmov 0.0   ;;  %vm371_vm0 = vmmov 0   ;;  %v36_v1 = vld [vmem:[#allocation2] sm:$0xff]  ;;  %v37_v2 = vld [vmem:[#allocation5] sm:$0xff] }
  0x26   :  { %272 = vmatprep.subr.mxu0 %v370_v0  ;;  %274 = vmatprep.mubr.msk.f32.mxu0 %vm371_vm0, %v370_v0  ;;  %vm70_vm1 = vcmask 64512   ;;  %v372_v16 = vmov 683565275   ;;  %v373_v18 = vmov 2475754826   ;;  %s378_s1 = smov [#allocation7]  }
  0x27   :  { %38 = vxpose.xlu0.b32.start.end [1/1] (short) (narrow) %v36_v1, 8  ;;  %273 = vmatpush3.msra.mxu0 %v37_v2  ;;  %v374_v21 = vmov 2131351028   ;;  %v375_v24 = vmov 2102212464   ;;  %s255_s4 = sshll.u32 %s378_s1, 4  ;;  %s256_s4 = int_to_ptr.vmem [resolvable:$true] %s255_s4 }
  0x28   :  { %v376_v27 = vmov 920167782   ;;  %v377_v30 = vmov 1326507024   ;;  %s340_s5 = scalar_lea.vmem %s256_s4, 128  ;;  %p345_p3 = scmp.lt.s32.totalorder %s256_s4, %s256_s4 }
  0x29   :  { %p341_p2 = scmp.ne.s32.totalorder %s256_s4, %s340_s5  ;;  %p346_p4 = scmp.lt.s32.totalorder %s340_s5, %s340_s5 }
  0x2b   :  { %p347_p5 = por %p346_p4, %p345_p3 }
  0x2d   :  { %p348_p6 = pnand %p347_p5, %p341_p2 }
  0xa7   :  { %v54_v3 = vpop.trf.xlu0 }
  0xa8   :  { %275 = vmatmul.mubr.msk.f32.vlgmr.msra.gmra.mrb[0].mxu0 %vm70_vm1, %v54_v3 }
 0x17b   :  { %v418_v4 = vpop.f32.mrb[0].mxu0 }
 0x17c   :  { %v147_v5 = vand.u32 2139095040, %v418_v4  ;;  %v276_v6 = vpop.f32.mrb[1].mxu0  ;;  %v144_v10 = vand.u32 2147483647, %v418_v4  ;;  %vm146_vm9 = vcmp.lt.s32.totalorder %v418_v4, 0  ;;  %vm236_vm14 = vweird.f32 %v418_v4 }
 0x17e   :  { %v148_v7 = vshrl.u32 %v147_v5, 23  ;;  %v151_v13 = vand.u32 8388607, %v144_v10  ;;  %vm145_vm10 = vcmp.le.f32.partialorder %v144_v10, 0.7853982 }
 0x180   :  { %v266_v8 = vadd.s32 4294967169, %v148_v7  ;;  %v152_v32 = vor.u32 8388608, %v151_v13 }
 0x182   :  { %v154_v9 = vadd.s32 1, %v266_v8  ;;  %v192_v46 = vshll.u32 %v152_v32, 8 }
 0x184   :  { %vm155_vm2 = vcmp.gt.s32.totalorder %v154_v9, 0 }
 0x185   :  { %v156_v11 = vsel %vm155_vm2, %v154_v9, 0 }
 0x186   :  { %v158_v12 = vand.u32 31, %v156_v11  ;;  %v157_v15 = vshrl.u32 %v156_v11, 5 }
 0x188   :  { %v159_v14 = vsub.s32 32, %v158_v12  ;;  %v161_v17 = vshll.u32 %v372_v16, %v158_v12  ;;  %v164_v19 = vshll.u32 %v373_v18, %v158_v12  ;;  %v167_v23 = vshll.u32 %v374_v21, %v158_v12 }
 0x189   :  { %v170_v26 = vshll.u32 %v375_v24, %v158_v12  ;;  %v173_v29 = vshll.u32 %v376_v27, %v158_v12  ;;  %vm176_vm3 = vcmp.lt.s32.totalorder %v157_v15, 1  ;;  %vm179_vm4 = vcmp.lt.s32.totalorder %v157_v15, 4 }
 0x18a   :  { %v162_v20 = vshrl.u32 %v373_v18, %v159_v14  ;;  %v165_v22 = vshrl.u32 %v374_v21, %v159_v14  ;;  %v168_v25 = vshrl.u32 %v375_v24, %v159_v14  ;;  %v171_v28 = vshrl.u32 %v376_v27, %v159_v14 }
 0x18b   :  { %v174_v31 = vshrl.u32 %v377_v30, %v159_v14  ;;  %v160_v41 = vshrl.u32 %v372_v16, %v159_v14  ;;  %vm178_vm5 = vcmp.lt.s32.totalorder %v157_v15, 3  ;;  %vm177_vm6 = vcmp.lt.s32.totalorder %v157_v15, 2 }
 0x18c   :  { %v163_v33 = vor.u32 %v162_v20, %v161_v17  ;;  %v166_v34 = vor.u32 %v165_v22, %v164_v19  ;;  %v169_v35 = vor.u32 %v168_v25, %v167_v23  ;;  %v172_v36 = vor.u32 %v171_v28, %v170_v26 }
 0x18d   :  { %v175_v37 = vor.u32 %v174_v31, %v173_v29 }
 0x18e   :  { %v181_v38 = vsel %vm179_vm4, %v169_v35, 2102212464  ;;  %v184_v39 = vsel %vm176_vm3, %v163_v33, %v166_v34  ;;  %v188_v40 = vsel %vm176_vm3, %v166_v34, %v169_v35  ;;  %v185_v42 = vsel %vm179_vm4, %v172_v36, 920167782 }
 0x18f   :  { %v189_v43 = vsel %vm179_vm4, %v175_v37, 1326507024  ;;  %v186_v44 = vsel %vm178_vm5, %v169_v35, %v185_v42  ;;  %v180_v47 = vsel %vm176_vm3, %v160_v41, %v163_v33  ;;  %v182_v48 = vsel %vm178_vm5, %v166_v34, %v181_v38 }
 0x190   :  { %v190_v45 = vsel %vm178_vm5, %v172_v36, %v189_v43  ;;  %v187_v49 = vsel %vm177_vm6, %v184_v39, %v186_v44  ;;  %v183_v55 = vsel %vm177_vm6, %v180_v47, %v182_v48 }
 0x191   :  { %v191_v50 = vsel %vm177_vm6, %v188_v40, %v190_v45  ;;  %v427_v53 = vmul.u32.u64.low %v192_v46, %v187_v49  ;;  %v428_v54 = vmul.u32.u64.high %v192_v46, %v187_v49, %v427_v53  ;;  %v199_v57 = vmul.u32 %v192_v46, %v183_v55 }
 0x192   :  { %v424_v51 = vmul.u32.u64.low %v192_v46, %v191_v50  ;;  %v425_v52 = vmul.u32.u64.high %v192_v46, %v191_v50, %v424_v51 }
 0x193   :  { %v202_v56 = vadd.s32 1, %v428_v54 }
 0x194   :  { %vm201_vm7 = vc.u32 %v425_v52, %v427_v53  ;;  %v200_v6 = vadd.s32 %v427_v53, %v425_v52 }
 0x195   :  { %v203_v58 = vsel %vm201_vm7, %v202_v56, %v428_v54 }
 0x196   :  { %v204_v59 = vadd.s32 %v203_v58, %v199_v57 }
 0x198   :  { %v205_v60 = vadd.s32 536870912, %v204_v59 }
 0x19a   :  { %v206_v61 = vshrl.u32 %v205_v60, 30 }
 0x19c   :  { %v207_v62 = vshll.u32 %v206_v61, 30  ;;  %v230_v19 = vsub.s32 4, %v206_v61 }
 0x19e   :  { %v208_v63 = vsub.s32 %v204_v59, %v207_v62  ;;  %v231_v22 = vsel %vm146_vm9, %v230_v19, %v206_v61 }
 0x19f   :  { %v233_v24 = vsel %vm145_vm10, 0, %v231_v22 }
 0x1a0   :  { %v210_v0 = vsub.s32 0, %v208_v63  ;;  %v237_v25 = vadd.s32 3, %v233_v24 }
 0x1a2   :  { %v267_v1 = vmin.u32 %v210_v0, %v208_v63  ;;  %v238_v26 = vand.u32 3, %v237_v25 }
 0x1a4   :  { %v212_v2 = vclz %v267_v1  ;;  %vm243_vm11 = vcmp.eq.s32.totalorder %v238_v26, 2  ;;  %vm240_vm12 = vcmp.eq.s32.totalorder %v238_v26, 0  ;;  %vm239_vm13 = vcmp.lt.s32.totalorder %v238_v26, 2 }
 0x1a6   :  { %v268_v3 = vadd.s32 4294967294, %v212_v2 }
 0x1a8   :  { %vm269_vm8 = vcmp.lt.s32.totalorder %v268_v3, 0 }
 0x1a9   :  { %v215_v5 = vsel %vm269_vm8, 0, %v268_v3 }
 0x1aa   :  { %v216_v7 = vsub.s32 32, %v215_v5  ;;  %v220_v8 = vsub.s32 4294967266, %v215_v5  ;;  %v217_v9 = vshll.u32 %v208_v63, %v215_v5 }
 0x1ac   :  { %v218_v11 = vshrl.u32 %v200_v6, %v216_v7  ;;  %v221_v12 = vadd.s32 127, %v220_v8 }
 0x1ae   :  { %v219_v13 = vor.u32 %v218_v11, %v217_v9  ;;  %v222_v14 = vshll.u32 %v221_v12, 23 }
 0x1b0   :  { %v223_v15 = vor.u32 4788187, %v222_v14  ;;  %v226_v17 = vcvt.s32.f32 %v219_v13 }
 0x1b2   :  { %v224_v16 = vand.u32 2147483647, %v223_v15 }
 0x1b4   :  { %v227_v18 = vmul.f32 %v226_v17, %v224_v16 }
 0x1b6   :  { %v228_v20 = vxor.u32 2147483648, %v227_v18 }
 0x1b8   :  { %v229_v21 = vsel %vm146_vm9, %v228_v20, %v227_v18 }
 0x1b9   :  { %v232_v23 = vsel %vm145_vm10, %v418_v4, %v229_v21 }
 0x1ba   :  { %292 = vcosq.f32 %v232_v23 }
 0x1bb   :  { %294 = vsinq.f32 %v232_v23 }
 0x1c4   :  { %v293_v27 = vpop.eup %292 }
 0x1c5   :  { %v295_v28 = vpop.eup %294  ;;  %v244_v29 = vxor.u32 2147483648, %v293_v27 }
 0x1c6   :  { %v241_v30 = vxor.u32 2147483648, %v295_v28 }
 0x1c7   :  { %v245_v31 = vsel %vm243_vm11, %v244_v29, %v295_v28 }
 0x1c8   :  { %v242_v10 = vsel %vm240_vm12, %v293_v27, %v241_v30 }
 0x1c9   :  { %v246_v32 = vsel %vm239_vm13, %v242_v10, %v245_v31 }
 0x1ca   :  { %v247_v33 = vsel %vm236_vm14, nan, %v246_v32 }
 0x1cb   :  { %248 = vst [vmem:[#allocation7] sm:$0xff] %v247_v33 }
 0x1cc   :  { %351 = shalt.err (!%p348_p6)
}
 0x1cd   :  { %s352_s8 = scalar_lea.hbm %s453_s2, 128 }
 0x1ce   :  { %p353_p7 = scmp.ne.s32.totalorder %s453_s2, %s352_s8  ;;  %p356_p8 = scmp.lt.u32.totalorder %s352_s8, %s453_s2 }
 0x1d0   :  { %p358_p9 = pnand %p356_p8, %p353_p7 }
 0x1d2   :  { %361 = shalt.err (!%p358_p9)
}
 0x1d3   :  { %258 = dma.vmem_to_hbm [thread:$0]  %s256_s4, 128, %s453_s2, [#allocation4]  }
 0x1d4   :  { %366 = dma.done.wait [#allocation4], 128  }
 0x1d5   :  { %367 = vsyncadd [#allocation4], 4294967168 }
 0x1d6   :  { %262 = vsyncpa [#allocation3], 1 }
 0x1d7   :  { %263 = vsyncpa [#allocation6], 1 }
 0x1d8   :  { %264 = vsyncpa [#allocation4], 1 }

</bundles_post_ra>
